<compile_context>
chip_gen: v5e
topology: v5e:2x2
jax: 0.10.0
libtpu: 0.0.40
codegen_flags: <defaults>
</compile_context>

<pallas_src>
import functools

import jax
import jax.numpy as jnp
from jax.experimental import pallas as pl
from jax.experimental.pallas import tpu as pltpu

LANES = 128
SUBLANES = 8
_MAX_CHUNK_ROWS = 64          # 64 x 128 f32 = 8 vregs per input chunk
_VMEM_LIMIT_BYTES = 32 * 1024 * 1024


def _tiny(dtype):
    """torch.finfo(dtype).smallest_normal equivalent (f32 fallback for ints)."""
    if jnp.issubdtype(dtype, jnp.floating):
        return float(jnp.finfo(dtype).tiny)
    return float(jnp.finfo(jnp.float32).tiny)


def _device_kind():
    try:
        return jax.devices()[0].device_kind.lower()
    except Exception:  # pragma: no cover - defensive
        return ""


def _is_v7x(kind):
    return ("v7" in kind) or ("7x" in kind)


def _make_dfl_kernel(rows, tile, steps, blocks_total, tiny_p, tiny_t):
    """Kernel body with all shape/constant parameters closed over (static)."""
    chunk = min(_MAX_CHUNK_ROWS, tile)
    n_full = tile // chunk
    rem_rows = tile % chunk

    def chunk_sum(pred_ref, tgt_ref, row_off, nrows, block_start, mask_rows):
        # Load one vreg-sized chunk; upcast on the VPU (HBM stays in input dtype).
        p = pred_ref[pl.ds(row_off, nrows), :].astype(jnp.float32)
        t = tgt_ref[pl.ds(row_off, nrows), :].astype(jnp.float32)

        valid = t > 0
        if mask_rows:
            # Only emitted for the (single) partial tail block per split.
            gids = (block_start + row_off
                    + jax.lax.broadcasted_iota(jnp.int32, (nrows, LANES), 0))
            valid = jnp.logical_and(valid, gids < rows)

        p_c = jnp.maximum(p, tiny_p)      # clamp(pred,   smallest_normal)
        t_c = jnp.maximum(t, tiny_t)      # clamp(target, smallest_normal)

        # Select (not multiply) so log() of masked garbage never propagates.
        contrib = jnp.where(valid, t * (jnp.log(t_c) - jnp.log(p_c)), 0.0)

        if nrows % SUBLANES == 0:
            # Fold into an (8,128) vreg slab: pure VPU adds, layout-free reshape.
            return contrib.reshape(nrows // SUBLANES, SUBLANES, LANES).sum(axis=0)
        # Tiny single-block inputs (< 8 rows): XLU cross-sublane reduce + scatter.
        row_sum = contrib.sum(axis=0, keepdims=True)                 # (1, LANES)
        sub = jax.lax.broadcasted_iota(jnp.int32, (SUBLANES, LANES), 0)
        return jnp.where(sub == 0, row_sum, 0.0)                     # (8, LANES)

    def block_partial(pred_ref, tgt_ref, block_start, mask_rows):
        def body(k, acc):
            off = pl.multiple_of(k * chunk, chunk)
            return acc + chunk_sum(pred_ref, tgt_ref, off, chunk,
                                   block_start, mask_rows)

        if n_full == 1:
            acc = chunk_sum(pred_ref, tgt_ref, 0, chunk, block_start, mask_rows)
        else:
            acc = jax.lax.fori_loop(0, n_full, body,
                                    jnp.zeros((SUBLANES, LANES), jnp.float32),
                                    unroll=2)
        if rem_rows:
            acc = acc + chunk_sum(pred_ref, tgt_ref, n_full * chunk, rem_rows,
                                  block_start, mask_rows)
        return acc

    def kernel(pred_ref, tgt_ref, out_ref):
        c = pl.program_id(0)      # split ("parallel") axis
        i = pl.program_id(1)      # reduction ("arbitrary") axis

        # Zero this split's resident accumulator block on its first step.
        @pl.when(i == 0)
        def _():
            out_ref[...] = jnp.zeros_like(out_ref)

        block_idx = c * steps + i
        block_start = block_idx * tile
        is_real = block_idx < blocks_total        # not a duplicated (clamped) block
        is_full = block_start + tile <= rows      # every row in range

        # Fast path (the vast majority of steps): only the semantic t>0 mask.
        @pl.when(jnp.logical_and(is_real, is_full))
        def _():
            out_ref[...] += block_partial(pred_ref, tgt_ref, block_start, False)[None]

        # Partial tail block: add the iota row mask.
        @pl.when(jnp.logical_and(is_real, jnp.logical_not(is_full)))
        def _():
            out_ref[...] += block_partial(pred_ref, tgt_ref, block_start, True)[None]

        # Duplicated tail blocks (block_idx >= blocks_total) contribute nothing.

    return kernel


@functools.partial(jax.jit, static_argnames=("tile_rows", "num_splits"))
def _dfl_impl(prediction, target, tile_rows, num_splits):
    assert prediction.shape == target.shape
    assert tile_rows % SUBLANES == 0

    # smallest_normal of the *original* dtypes (matches torch.finfo(...)).
    tiny_p = _tiny(prediction.dtype)
    tiny_t = _tiny(target.dtype)

    p = prediction.reshape(-1)    # free metadata reshape
    t = target.reshape(-1)
    total = p.size
    rows = total // LANES
    rem = total - rows * LANES

    # <128-element lane remainder: plain jnp on a tiny slice (no full-array
    # pad/concatenate, no wrapper-side astype copies).
    tail_sum = jnp.float32(0.0)
    if rem:
        tp = p[rows * LANES:].astype(jnp.float32)
        tt = t[rows * LANES:].astype(jnp.float32)
        tail_contrib = jnp.where(
            tt > 0,
            tt * (jnp.log(jnp.maximum(tt, tiny_t)) - jnp.log(jnp.maximum(tp, tiny_p))),
            0.0)
        tail_sum = jnp.sum(tail_contrib, dtype=jnp.float32)

    if rows == 0:
        return tail_sum

    # Lane-aligned prefix in the original dtype; kernel upcasts on load.
    if rem:
        p_main = p[: rows * LANES]
        t_main = t[: rows * LANES]
    else:
        p_main, t_main = p, t
    p2 = p_main.reshape(rows, LANES)
    t2 = t_main.reshape(rows, LANES)

    # Block / grid geometry (all static at trace time).
    if rows >= tile_rows:
        tile = tile_rows
    elif rows >= SUBLANES:
        tile = (rows // SUBLANES) * SUBLANES     # largest multiple of 8 <= rows
    else:
        tile = rows                              # tiny input: full-dim block
    blocks_total = -(-rows // tile)
    num_splits_eff = max(1, min(int(num_splits), blocks_total))
    steps = -(-blocks_total // num_splits_eff)

    def in_index_map(c, i):
        # Clamp so every grid step maps to an existing block; duplicated tail
        # blocks are skipped inside the kernel (zero contribution).
        return (jnp.minimum(c * steps + i, blocks_total - 1), 0)

    out = pl.pallas_call(
        _make_dfl_kernel(rows, tile, steps, blocks_total, tiny_p, tiny_t),
        out_shape=jax.ShapeDtypeStruct((num_splits_eff, SUBLANES, LANES), jnp.float32),
        grid_spec=pltpu.PrefetchScalarGridSpec(
            num_scalar_prefetch=0,
            grid=(num_splits_eff, steps),
            in_specs=[
                pl.BlockSpec((tile, LANES), in_index_map),
                pl.BlockSpec((tile, LANES), in_index_map),
            ],
            out_specs=pl.BlockSpec((1, SUBLANES, LANES), lambda c, i: (c, 0, 0)),
        ),
        compiler_params=pltpu.CompilerParams(
            dimension_semantics=("parallel", "arbitrary"),
            vmem_limit_bytes=_VMEM_LIMIT_BYTES,
        ),
    )(p2, t2)

    # Tiny final reduce (num_splits * 1024 f32) done in the wrapper.
    return jnp.sum(out, dtype=jnp.float32) + tail_sum


def distribution_focal_loss(prediction, target, tile_rows=None, num_splits=None):
    """Scalar DistributionFocalLoss forward (alpha/beta unused, as in PyTorch)."""
    if tile_rows is None or num_splits is None:
        kind = _device_kind()
        if tile_rows is None:
            tile_rows = 4096 if _is_v7x(kind) else 2048
        if num_splits is None:
            num_splits = 2 if _is_v7x(kind) else 1
    return _dfl_impl(prediction, target, int(tile_rows), int(num_splits))


class DistributionFocalLoss:
    """API-parity wrapper for the PyTorch module (alpha/beta stored, unused)."""

    def __init__(self, alpha=2, beta=4):
        self.alpha = alpha
        self.beta = beta

    def __call__(self, prediction, target):
        return distribution_focal_loss(prediction, target)


def _reference(prediction, target):
    dtype = jnp.float32
    p = prediction.astype(dtype)
    t = target.astype(dtype)
    tiny = jnp.finfo(dtype).tiny
    pos = (t > 0).astype(dtype)
    loss = -jnp.sum(jnp.log(jnp.maximum(p, tiny)) * t * pos)
    min_loss = jnp.sum(jnp.log(jnp.maximum(t, tiny)) * t * pos)
    return loss + min_loss


def _make_inputs(key, shape):
    k1, k2 = jax.random.split(key)
    prediction = jax.random.uniform(k1, shape, jnp.float32, minval=1e-4, maxval=1.0)
    raw = jax.random.uniform(k2, shape, jnp.float32)
    target = jnp.where(raw > 0.7, raw, 0.0)
    return prediction, target


if __name__ == "__main__":
    key = jax.random.PRNGKey(0)
    k_a, k_b, k_c = jax.random.split(key, 3)

    # 1) Typical NCHW heatmap shape (single full block, fast path).
    pred_a, tgt_a = _make_inputs(k_a, (2, 4, 16, 16))
    loss_fn = DistributionFocalLoss()
    out_a = jax.block_until_ready(loss_fn(pred_a, tgt_a))
    ref_a = _reference(pred_a, tgt_a)
    assert jnp.allclose(out_a, ref_a, rtol=1e-3, atol=1e-3), (out_a, ref_a)

    # 2) Larger shape with default tiles: exercises the chunked fori_loop
    #    (2 full 64-row chunks + a 32-row remainder chunk) on the fast path.
    pred_b, tgt_b = _make_inputs(k_b, (2, 4, 40, 64))
    out_b = jax.block_until_ready(distribution_focal_loss(pred_b, tgt_b))
    ref_b = _reference(pred_b, tgt_b)
    assert jnp.allclose(out_b, ref_b, rtol=1e-3, atol=1e-3), (out_b, ref_b)

    # 3) Same data, small tiles + 2-way split: exercises the multi-step grid,
    #    the masked partial tail block and the duplicated-block skip path.
    out_c = jax.block_until_ready(
        distribution_focal_loss(pred_b, tgt_b, tile_rows=64, num_splits=2))
    assert jnp.allclose(out_c, ref_b, rtol=1e-3, atol=1e-3), (out_c, ref_b)

    # 4) Lane-misaligned element count: wrapper remainder path + tiny (<8 row)
    #    single-block kernel with the cross-sublane fold.
    pred_d, tgt_d = _make_inputs(k_c, (2, 3, 50))
    out_d = jax.block_until_ready(distribution_focal_loss(pred_d, tgt_d))
    ref_d = _reference(pred_d, tgt_d)
    assert jnp.allclose(out_d, ref_d, rtol=1e-3, atol=1e-3), (out_d, ref_d)

    print("KERNEL_OK")
</pallas_src>

<mosaic_0001>
module attributes {stable_mosaic.version = 11 : i64} {
  func.func @kernel(%arg0: i32, %arg1: i32, %arg2: memref<16x128xf32, #tpu.memory_space<vmem>>, %arg3: memref<16x128xf32, #tpu.memory_space<vmem>>, %arg4: memref<1x8x128xf32, #tpu.memory_space<vmem>>) attributes {dimension_semantics = [#tpu.dimension_semantics<parallel>, #tpu.dimension_semantics<arbitrary>], iteration_bounds = array<i64: 1, 1>, scalar_prefetch = 0 : i64, scratch_operands = 0 : i64, tpu.core_type = #tpu.core_type<tc>, window_params = [{transform_indices = @transform_0, window_bounds = array<i64: 16, 128>}, {transform_indices = @transform_1, window_bounds = array<i64: 16, 128>}, {transform_indices = @transform_2, window_bounds = array<i64: 1, 8, 128>}]} {
    %c0_i32 = arith.constant 0 : i32
    %0 = arith.cmpi eq, %arg1, %c0_i32 : i32
    %1 = arith.extui %0 : i1 to i32
    %c0_i32_0 = arith.constant 0 : i32
    %2 = arith.cmpi ne, %1, %c0_i32_0 : i32
    scf.if %2 {
      %cst = arith.constant 0.000000e+00 : f32
      %16 = vector.broadcast %cst : f32 to vector<1x8x128xf32>
      %c0 = arith.constant 0 : index
      %c0_6 = arith.constant 0 : index
      %c0_7 = arith.constant 0 : index
      %17 = vector.load %arg4[%c0, %c0_6, %c0_7] : memref<1x8x128xf32, #tpu.memory_space<vmem>>, vector<1x8x128xf32>
      tpu.vector_store %arg4[%c0, %c0_6, %c0_7], %16 {strides = array<i32>} : memref<1x8x128xf32, #tpu.memory_space<vmem>>, vector<1x8x128xf32>,
    } else {
    }
    %c1_i32 = arith.constant 1 : i32
    %3 = arith.muli %arg0, %c1_i32 : i32
    %4 = arith.addi %3, %arg1 : i32
    %c16_i32 = arith.constant 16 : i32
    %5 = arith.muli %4, %c16_i32 : i32
    %c1_i32_1 = arith.constant 1 : i32
    %6 = arith.cmpi slt, %4, %c1_i32_1 : i32
    %c16_i32_2 = arith.constant 16 : i32
    %7 = arith.addi %5, %c16_i32_2 : i32
    %c16_i32_3 = arith.constant 16 : i32
    %8 = arith.cmpi sle, %7, %c16_i32_3 : i32
    %9 = arith.andi %6, %8 : i1
    %10 = arith.extui %9 : i1 to i32
    %c0_i32_4 = arith.constant 0 : i32
    %11 = arith.cmpi ne, %10, %c0_i32_4 : i32
    scf.if %11 {
      %c0 = arith.constant 0 : index
      %c0_6 = arith.constant 0 : index
      %c0_7 = arith.constant 0 : index
      %16 = vector.load %arg4[%c0, %c0_6, %c0_7] : memref<1x8x128xf32, #tpu.memory_space<vmem>>, vector<1x8x128xf32>
      %c0_8 = arith.constant 0 : index
      %c0_9 = arith.constant 0 : index
      %17 = vector.load %arg2[%c0_8, %c0_9] : memref<16x128xf32, #tpu.memory_space<vmem>>, vector<16x128xf32>
      %c0_10 = arith.constant 0 : index
      %c0_11 = arith.constant 0 : index
      %18 = vector.load %arg3[%c0_10, %c0_11] : memref<16x128xf32, #tpu.memory_space<vmem>>, vector<16x128xf32>
      %cst = arith.constant 0.000000e+00 : f32
      %19 = vector.broadcast %cst : f32 to vector<16x128xf32>
      %20 = arith.cmpf ogt, %18, %19 : vector<16x128xf32>
      %cst_12 = arith.constant 1.17549435E-38 : f32
      %21 = vector.broadcast %cst_12 : f32 to vector<16x128xf32>
      %22 = arith.maximumf %17, %21 : vector<16x128xf32>
      %cst_13 = arith.constant 1.17549435E-38 : f32
      %23 = vector.broadcast %cst_13 : f32 to vector<16x128xf32>
      %24 = arith.maximumf %18, %23 : vector<16x128xf32>
      %25 = math.log %24 : vector<16x128xf32>
      %26 = math.log %22 : vector<16x128xf32>
      %27 = arith.subf %25, %26 : vector<16x128xf32>
      %28 = arith.mulf %18, %27 : vector<16x128xf32>
      %cst_14 = arith.constant 0.000000e+00 : f32
      %29 = vector.broadcast %cst_14 : f32 to vector<16x128xf32>
      %30 = arith.select %20, %28, %29 : vector<16x128xi1>, vector<16x128xf32>
      %31 = vector.shape_cast %30 : vector<16x128xf32> to vector<2x8x128xf32>
      %cst_15 = arith.constant dense<0.000000e+00> : vector<8x128xf32>
      %32 = vector.multi_reduction <add>, %31, %cst_15 [0] : vector<2x8x128xf32> to vector<8x128xf32>
      %33 = vector.shape_cast %32 : vector<8x128xf32> to vector<1x8x128xf32>
      %34 = arith.addf %16, %33 : vector<1x8x128xf32>
      %c0_16 = arith.constant 0 : index
      %c0_17 = arith.constant 0 : index
      %c0_18 = arith.constant 0 : index
      %35 = vector.load %arg4[%c0_16, %c0_17, %c0_18] : memref<1x8x128xf32, #tpu.memory_space<vmem>>, vector<1x8x128xf32>
      tpu.vector_store %arg4[%c0_16, %c0_17, %c0_18], %34 {strides = array<i32>} : memref<1x8x128xf32, #tpu.memory_space<vmem>>, vector<1x8x128xf32>,
    } else {
    }
    %true = arith.constant true
    %12 = arith.xori %8, %true : i1
    %13 = arith.andi %6, %12 : i1
    %14 = arith.extui %13 : i1 to i32
    %c0_i32_5 = arith.constant 0 : i32
    %15 = arith.cmpi ne, %14, %c0_i32_5 : i32
    scf.if %15 {
      %c0 = arith.constant 0 : index
      %c0_6 = arith.constant 0 : index
      %c0_7 = arith.constant 0 : index
      %16 = vector.load %arg4[%c0, %c0_6, %c0_7] : memref<1x8x128xf32, #tpu.memory_space<vmem>>, vector<1x8x128xf32>
      %c0_8 = arith.constant 0 : index
      %c0_9 = arith.constant 0 : index
      %17 = vector.load %arg2[%c0_8, %c0_9] : memref<16x128xf32, #tpu.memory_space<vmem>>, vector<16x128xf32>
      %c0_10 = arith.constant 0 : index
      %c0_11 = arith.constant 0 : index
      %18 = vector.load %arg3[%c0_10, %c0_11] : memref<16x128xf32, #tpu.memory_space<vmem>>, vector<16x128xf32>
      %cst = arith.constant 0.000000e+00 : f32
      %19 = vector.broadcast %cst : f32 to vector<16x128xf32>
      %20 = arith.cmpf ogt, %18, %19 : vector<16x128xf32>
      %c0_i32_12 = arith.constant 0 : i32
      %21 = arith.addi %5, %c0_i32_12 : i32
      %22 = tpu.iota {dimensions = array<i32: 0>} : vector<16x128xi32>
      %23 = vector.broadcast %21 : i32 to vector<16x128xi32>
      %24 = arith.addi %23, %22 : vector<16x128xi32>
      %c16_i32_13 = arith.constant 16 : i32
      %25 = vector.broadcast %c16_i32_13 : i32 to vector<16x128xi32>
      %26 = arith.cmpi slt, %24, %25 : vector<16x128xi32>
      %27 = arith.andi %20, %26 : vector<16x128xi1>
      %cst_14 = arith.constant 1.17549435E-38 : f32
      %28 = vector.broadcast %cst_14 : f32 to vector<16x128xf32>
      %29 = arith.maximumf %17, %28 : vector<16x128xf32>
      %cst_15 = arith.constant 1.17549435E-38 : f32
      %30 = vector.broadcast %cst_15 : f32 to vector<16x128xf32>
      %31 = arith.maximumf %18, %30 : vector<16x128xf32>
      %32 = math.log %31 : vector<16x128xf32>
      %33 = math.log %29 : vector<16x128xf32>
      %34 = arith.subf %32, %33 : vector<16x128xf32>
      %35 = arith.mulf %18, %34 : vector<16x128xf32>
      %cst_16 = arith.constant 0.000000e+00 : f32
      %36 = vector.broadcast %cst_16 : f32 to vector<16x128xf32>
      %37 = arith.select %27, %35, %36 : vector<16x128xi1>, vector<16x128xf32>
      %38 = vector.shape_cast %37 : vector<16x128xf32> to vector<2x8x128xf32>
      %cst_17 = arith.constant dense<0.000000e+00> : vector<8x128xf32>
      %39 = vector.multi_reduction <add>, %38, %cst_17 [0] : vector<2x8x128xf32> to vector<8x128xf32>
      %40 = vector.shape_cast %39 : vector<8x128xf32> to vector<1x8x128xf32>
      %41 = arith.addf %16, %40 : vector<1x8x128xf32>
      %c0_18 = arith.constant 0 : index
      %c0_19 = arith.constant 0 : index
      %c0_20 = arith.constant 0 : index
      %42 = vector.load %arg4[%c0_18, %c0_19, %c0_20] : memref<1x8x128xf32, #tpu.memory_space<vmem>>, vector<1x8x128xf32>
      tpu.vector_store %arg4[%c0_18, %c0_19, %c0_20], %41 {strides = array<i32>} : memref<1x8x128xf32, #tpu.memory_space<vmem>>, vector<1x8x128xf32>,
    } else {
    }
    return
  }
  func.func @transform_0(%arg0: i32, %arg1: i32) -> (i32, i32) {
    %c1_i32 = arith.constant 1 : i32
    %0 = arith.muli %arg0, %c1_i32 : i32
    %1 = arith.addi %0, %arg1 : i32
    %c0_i32 = arith.constant 0 : i32
    %2 = arith.minsi %1, %c0_i32 : i32
    %c0_i32_0 = arith.constant 0 : i32
    %c0_i32_1 = arith.constant 0 : i32
    return %2, %c0_i32_0 : i32, i32
  }
  func.func @transform_1(%arg0: i32, %arg1: i32) -> (i32, i32) {
    %c1_i32 = arith.constant 1 : i32
    %0 = arith.muli %arg0, %c1_i32 : i32
    %1 = arith.addi %0, %arg1 : i32
    %c0_i32 = arith.constant 0 : i32
    %2 = arith.minsi %1, %c0_i32 : i32
    %c0_i32_0 = arith.constant 0 : i32
    %c0_i32_1 = arith.constant 0 : i32
    return %2, %c0_i32_0 : i32, i32
  }
  func.func @transform_2(%arg0: i32, %arg1: i32) -> (i32, i32, i32) {
    %c0_i32 = arith.constant 0 : i32
    %c0_i32_0 = arith.constant 0 : i32
    %c0_i32_1 = arith.constant 0 : i32
    return %arg0, %c0_i32, %c0_i32_0 : i32, i32, i32
  }
}

</mosaic_0001>

<bundles_post_ra>
// kernel: _dfl_impl.1
= control target key start
LH: loop header
LB: loop body
LE: loop exit
PB: predicated region body
PF: predicated region fallthrough
CT: control target
= control target key end

     0   :  { %s215_s0 = inlined_call_operand.vmem [shape: f32[16,128], index: 0, kind: input, shape index: {}]   ;;  %s216_s1 = inlined_call_operand.vmem [shape: f32[16,128], index: 1, kind: input, shape index: {}]   ;;  %s217_s2 = inlined_call_operand.vmem [shape: f32[1,8,128], index: 2, kind: output, shape index: {}]  }
   0x1   :  { %v90_v0 = vld [vmem:[%s215_s0] sm:$0xff]  ;;  %v91_v1 = vld [vmem:[%s215_s0 + $0x8] sm:$0xff] }
   0x2   :  { %v92_v2 = vld [vmem:[%s216_s1] sm:$0xff]  ;;  %v93_v3 = vld [vmem:[%s216_s1 + $0x8] sm:$0xff]  ;;  %v96_v4 = vmax.f32 %v90_v0, 1.1754944e-38  ;;  %v97_v6 = vmax.f32 %v91_v1, 1.1754944e-38 }
   0x3   :  { %v98_v5 = vmax.f32 %v92_v2, 1.1754944e-38  ;;  %v99_v7 = vmax.f32 %v93_v3, 1.1754944e-38  ;;  %vm94_vm0 = vcmp.gt.f32.partialorder %v92_v2, 0.0  ;;  %vm95_vm1 = vcmp.gt.f32.partialorder %v93_v3, 0.0 }
   0x5   :  { %177 = vlog2.f32 %v98_v5 }
   0x6   :  { %179 = vlog2.f32 %v99_v7 }
   0x7   :  { %181 = vlog2.f32 %v96_v4 }
   0x8   :  { %183 = vlog2.f32 %v97_v6 }
   0xb   :  { %v178_v8 = vpop.eup %177 }
   0xc   :  { %v180_v9 = vpop.eup %179  ;;  %v101_v10 = vmul.f32 0.6931472, %v178_v8 }
   0xd   :  { %v182_v11 = vpop.eup %181  ;;  %v103_v12 = vmul.f32 0.6931472, %v180_v9 }
   0xe   :  { %v184_v13 = vpop.eup %183  ;;  %v105_v14 = vmul.f32 0.6931472, %v182_v11 }
   0xf   :  { %v107_v15 = vmul.f32 0.6931472, %v184_v13 }
  0x10   :  { %v108_v16 = vsub.f32 %v101_v10, %v105_v14 }
  0x11   :  { %v109_v17 = vsub.f32 %v103_v12, %v107_v15 }
  0x12   :  { %v110_v18 = vmul.f32 %v108_v16, %v92_v2 }
  0x13   :  { %v111_v19 = vmul.f32 %v109_v17, %v93_v3 }
  0x14   :  { %v112_v20 = vsel %vm94_vm0, %v110_v18, 0.0 }
  0x15   :  { %v113_v21 = vsel %vm95_vm1, %v111_v19, 0.0 }
  0x16   :  { %v114_v22 = vadd.f32 %v113_v21, %v112_v20 }
  0x18   :  { %116 = vst [vmem:[%s217_s2] sm:$0xff] %v114_v22 }

</bundles_post_ra>
